<compile_context>
chip_gen: v7x
topology: tpu7x:2x2x1
jax: 0.10.0
libtpu: 0.0.40
codegen_flags: <defaults>
</compile_context>

<pallas_src>
import functools

import jax
import jax.numpy as jnp
from jax import lax
from jax.experimental import pallas as pl
from jax.experimental.pallas import tpu as pltpu

BN_EPS = 1e-5


# --------------------------------------------------------------------------
# VMEM-aware tiling helpers
# --------------------------------------------------------------------------
def _round_up(v, m):
    return (v + m - 1) // m * m


def _round_down(v, m):
    return (v // m) * m


def _vmem_budget():
    """Per-call vmem_limit_bytes and the per-x-tile byte budget derived from it."""
    cap = 64 * 1024 * 1024  # conservative fallback = v7x physical VMEM
    try:
        info = pltpu.get_tpu_info()
        cap = int(getattr(info, "vmem_capacity_bytes", cap)) or cap
    except Exception:
        pass
    # Leave headroom: the apply pass holds double-buffered x and out tiles plus
    # f32 elementwise temporaries and the (lane-padded) per-(b, c) affine block.
    vmem_limit = max(32 * 1024 * 1024, min(cap * 3 // 4, 100 * 1024 * 1024))
    tile_budget = min(vmem_limit // 8, 14 * 1024 * 1024)
    return vmem_limit, tile_budget


def _pick_tiles(B, C, L, itemsize, budget):
    """(B_tile, C_tile, L_tile): C_tile is a multiple of 8 (or == C when C < 8),
    L_tile a multiple of 128 (or == L when L <= 128), blocks never exceed the
    array dims and the tile stays within `budget` bytes."""
    c_min = C if C < 8 else 8
    l_min = L if L <= 128 else 128

    # Batch tile: largest *divisor* of B whose minimal block fits the budget
    # (divisor => no ragged batch tail, so no batch masking is needed).
    max_b = max(1, budget // max(1, c_min * l_min * itemsize))
    B_tile = B
    if B > max_b:
        B_tile = 1
        for d in range(max_b, 0, -1):
            if B % d == 0:
                B_tile = d
                break

    # Lane (last) dim: as large as the budget allows, then load-balanced.
    if L <= 128:
        L_tile = L
    else:
        max_l = max(128, _round_down(budget // (B_tile * c_min * itemsize), 128))
        L_tile = min(_round_down(L, 128), max_l)
        n_l = pl.cdiv(L, L_tile)
        L_tile = min(L_tile, _round_up(pl.cdiv(L, n_l), 128))

    # Sublane (channel) dim with the remaining budget, then load-balanced.
    if C < 8:
        C_tile = C
    else:
        max_c = max(8, _round_down(budget // (B_tile * L_tile * itemsize), 8))
        C_tile = min(_round_down(C, 8), max_c)
        n_c = pl.cdiv(C, C_tile)
        C_tile = min(C_tile, _round_up(pl.cdiv(C, n_c), 8))

    return B_tile, C_tile, L_tile


# --------------------------------------------------------------------------
# Pallas kernels
# --------------------------------------------------------------------------
def _stats_kernel(x_ref, sum_ref, sq_ref, *, C, L, C_tile, L_tile,
                  lane_group, n_lane_groups, n_l_per_shard, mask_c, mask_l):
    """Accumulate lane-dense per-channel sum / sum-of-squares over (B, L)."""
    si = pl.program_id(0)   # L-shard (megacore) axis
    ci = pl.program_id(1)   # channel-tile axis
    bi = pl.program_id(2)   # batch-tile reduction axis
    li = pl.program_id(3)   # L-tile reduction axis (within shard)

    @pl.when(jnp.logical_and(bi == 0, li == 0))
    def _init():
        sum_ref[...] = jnp.zeros_like(sum_ref)
        sq_ref[...] = jnp.zeros_like(sq_ref)

    # Ragged-edge masks: only built when C / L are unaligned (Python flags), so
    # the aligned fast path pays nothing.  Out-of-bounds lanes/rows of partial
    # edge blocks hold undefined data and must not reach the accumulator.
    c_valid = None
    if mask_c:
        c_idx = ci * C_tile + lax.broadcasted_iota(
            jnp.int32, (C_tile, lane_group), 0)
        c_valid = c_idx < C
    if mask_l:
        lane_iota = lax.broadcasted_iota(jnp.int32, (C_tile, lane_group), 1)
        l_base = (si * n_l_per_shard + li) * L_tile

    def body(g, carry):
        ps, pq = carry
        start = g * lane_group
        if not isinstance(start, int):
            start = pl.multiple_of(start, lane_group)
        chunk = x_ref[:, :, pl.ds(start, lane_group)].astype(jnp.float32)
        cs = jnp.sum(chunk, axis=0)                 # (C_tile, lane_group) VPU adds
        cq = jnp.sum(chunk * chunk, axis=0)
        valid = c_valid
        if mask_l:
            l_valid = (l_base + start + lane_iota) < L
            valid = l_valid if valid is None else jnp.logical_and(valid, l_valid)
        if valid is not None:
            cs = jnp.where(valid, cs, 0.0)
            cq = jnp.where(valid, cq, 0.0)
        return ps + cs, pq + cq

    init = (jnp.zeros((C_tile, lane_group), jnp.float32),
            jnp.zeros((C_tile, lane_group), jnp.float32))
    if n_lane_groups <= 8:
        acc = init
        for g in range(n_lane_groups):
            acc = body(g, acc)
        ps, pq = acc
    else:
        ps, pq = lax.fori_loop(0, n_lane_groups, body, init)

    # Lane-dense (unmasked) accumulator update; final 128->1 reduce is in glue.
    sum_ref[...] += ps[None, :, :]
    sq_ref[...] += pq[None, :, :]


def _apply_kernel(x_ref, mod_ref, o_ref):
    """out = x * a + s with (a, s) packed along the last dim of mod."""
    x = x_ref[...].astype(jnp.float32)              # (B_tile, C_tile, L_tile)
    mod = mod_ref[...]                              # (B_tile, C_tile, 2) f32
    a = mod[:, :, 0:1]
    s = mod[:, :, 1:2]
    o_ref[...] = (x * a + s).astype(o_ref.dtype)


# --------------------------------------------------------------------------
# Parameter preprocessing (plain JAX glue)
# --------------------------------------------------------------------------
def _spectral_normalize(w, u, n_power_iterations=1, eps=1e-12):
    """PyTorch spectral_norm forward semantics (one power iteration default)."""
    v = None
    for _ in range(n_power_iterations):
        v = w.T @ u
        v = v / jnp.maximum(jnp.linalg.norm(v), eps)
        u = w @ v
        u = u / jnp.maximum(jnp.linalg.norm(u), eps)
    sigma = u @ (w @ v)
    return w / sigma


# --------------------------------------------------------------------------
# Forward wrapper
# --------------------------------------------------------------------------
def fins_conditional_batch_norm_1d(x, noise, params, *, donate_x=False):
    """x: (B, C, L), noise: (B, condition_length). Training-mode forward."""
    B, C, L = x.shape
    vmem_limit, tile_budget = _vmem_budget()
    itemsize = jnp.dtype(x.dtype).itemsize
    B_tile, C_tile, L_tile = _pick_tiles(B, C, L, itemsize, tile_budget)
    n_b = B // B_tile                      # exact divisor by construction
    n_c = pl.cdiv(C, C_tile)
    n_l = pl.cdiv(L, L_tile)
    mask_c = (C % C_tile) != 0
    mask_l = (L % L_tile) != 0

    # Megacore: when every channel fits in one C tile the channel axis cannot be
    # sharded across TensorCores, so split the L reduction into two parallel
    # partial-sum shards instead (v7x has 2 TCs per chip).
    n_s = 2 if (n_c == 1 and n_l >= 2 and n_l % 2 == 0) else 1
    n_lps = n_l // n_s

    lane_group = L_tile if L_tile < 128 else 128
    n_lane_groups = L_tile // lane_group

    # ---- conditioning Linear (tiny; hoisted out of the streamed passes) ----
    w_sn = _spectral_normalize(params["lin_w"], params["lin_u"])        # (2C, K)
    gb = noise.astype(jnp.float32) @ w_sn.T.astype(jnp.float32)
    gb = gb + params["lin_b"].astype(jnp.float32)                       # (B, 2C)
    gamma, beta = gb[:, :C], gb[:, C:]                                  # (B, C)

    # ---- phase 1: streamed per-channel batch statistics (no input padding:
    #      ragged C / L tails are masked inside the kernel) ----
    stats_kernel = functools.partial(
        _stats_kernel, C=C, L=L, C_tile=C_tile, L_tile=L_tile,
        lane_group=lane_group, n_lane_groups=n_lane_groups,
        n_l_per_shard=n_lps, mask_c=mask_c, mask_l=mask_l)
    csum, csq = pl.pallas_call(
        stats_kernel,
        out_shape=(jax.ShapeDtypeStruct((n_s, C, lane_group), jnp.float32),
                   jax.ShapeDtypeStruct((n_s, C, lane_group), jnp.float32)),
        grid=(n_s, n_c, n_b, n_lps),
        in_specs=[pl.BlockSpec((B_tile, C_tile, L_tile),
                               lambda si, ci, bi, li: (bi, ci, si * n_lps + li))],
        out_specs=(pl.BlockSpec((1, C_tile, lane_group),
                                lambda si, ci, bi, li: (si, ci, 0)),
                   pl.BlockSpec((1, C_tile, lane_group),
                                lambda si, ci, bi, li: (si, ci, 0))),
        compiler_params=pltpu.CompilerParams(
            dimension_semantics=("parallel", "parallel", "arbitrary", "arbitrary"),
            vmem_limit_bytes=vmem_limit),
    )(x)

    # ---- fold BN + conditioning into one per-(b, c) affine (tiny JAX glue) ----
    count = jnp.float32(B * L)
    mean = jnp.sum(csum, axis=(0, 2)) / count                           # (C,)
    # NOTE: biased variance via E[x^2] - mean^2 in f32 (BatchNorm1d training
    # stats); can lose precision if |mean| >> std at very large B*L.
    var = jnp.maximum(jnp.sum(csq, axis=(0, 2)) / count - mean * mean, 0.0)
    inv_std = lax.rsqrt(var + BN_EPS)
    scale = params["bn_w"].astype(jnp.float32) * inv_std                # (C,)
    a = gamma * scale[None, :]                                          # (B, C)
    s = (gamma * params["bn_b"].astype(jnp.float32)[None, :]
         + beta - a * mean[None, :])                                    # (B, C)
    mod = jnp.stack([a, s], axis=-1)                                    # (B, C, 2)

    # ---- phase 2: streamed apply, out = x * a + s (no padding / final slice) ----
    out = pl.pallas_call(
        _apply_kernel,
        out_shape=jax.ShapeDtypeStruct((B, C, L), x.dtype),
        grid=(n_b, n_c, n_l),
        in_specs=[pl.BlockSpec((B_tile, C_tile, L_tile),
                               lambda bi, ci, li: (bi, ci, li)),
                  pl.BlockSpec((B_tile, C_tile, 2),
                               lambda bi, ci, li: (bi, ci, 0))],
        out_specs=pl.BlockSpec((B_tile, C_tile, L_tile),
                               lambda bi, ci, li: (bi, ci, li)),
        # When the caller donates x, the result is written in place over it.
        input_output_aliases=({0: 0} if donate_x else {}),
        compiler_params=pltpu.CompilerParams(
            dimension_semantics=("parallel", "parallel", "parallel"),
            vmem_limit_bytes=vmem_limit),
    )(x, mod)
    return out


# --------------------------------------------------------------------------
# Init + pure-JAX reference
# --------------------------------------------------------------------------
def init_params(key, num_features, condition_length):
    k_w, k_u = jax.random.split(key)
    # Linear(condition_length, 2*num_features) with weight ~ N(1, 0.02), bias = 0
    lin_w = 1.0 + 0.02 * jax.random.normal(
        k_w, (2 * num_features, condition_length), jnp.float32)
    lin_b = jnp.zeros((2 * num_features,), jnp.float32)
    # spectral_norm power-iteration vector u (normalized random normal)
    u = jax.random.normal(k_u, (2 * num_features,), jnp.float32)
    u = u / jnp.maximum(jnp.linalg.norm(u), 1e-12)
    # BatchNorm1d affine params at init: weight=1, bias=0
    bn_w = jnp.ones((num_features,), jnp.float32)
    bn_b = jnp.zeros((num_features,), jnp.float32)
    return {"lin_w": lin_w, "lin_b": lin_b, "lin_u": u, "bn_w": bn_w, "bn_b": bn_b}


def _reference(x, noise, params):
    B, C, L = x.shape
    mean = jnp.mean(x, axis=(0, 2), keepdims=True)
    var = jnp.mean((x - mean) ** 2, axis=(0, 2), keepdims=True)
    xhat = (x - mean) / jnp.sqrt(var + BN_EPS)
    normed = xhat * params["bn_w"].reshape(1, C, 1) + params["bn_b"].reshape(1, C, 1)
    w_sn = _spectral_normalize(params["lin_w"], params["lin_u"])
    gb = noise @ w_sn.T + params["lin_b"]
    gamma = gb[:, :C].reshape(B, C, 1)
    beta = gb[:, C:].reshape(B, C, 1)
    return gamma * normed + beta


if __name__ == "__main__":
    key = jax.random.PRNGKey(0)
    k_x, k_n, k_p, k2_x, k2_n, k2_p = jax.random.split(key, 6)

    # Case 1: small aligned shapes (single tile, no masking path).
    B, C, L, K = 2, 4, 16, 8   # batch, num_features, seq length, condition_length
    x = jax.random.normal(k_x, (B, C, L), jnp.float32)
    noise = jax.random.normal(k_n, (B, K), jnp.float32)
    params = init_params(k_p, C, K)
    out = jax.block_until_ready(fins_conditional_batch_norm_1d(x, noise, params))
    ref = _reference(x, noise, params)
    assert out.shape == (B, C, L)
    assert jnp.allclose(out, ref, atol=1e-4, rtol=1e-4), "mismatch (aligned case)"

    # Case 2: ragged shapes -> exercises partial C / L edge tiles + in-kernel masking.
    B2, C2, L2, K2 = 3, 20, 300, 8
    x2 = jax.random.normal(k2_x, (B2, C2, L2), jnp.float32)
    noise2 = jax.random.normal(k2_n, (B2, K2), jnp.float32)
    params2 = init_params(k2_p, C2, K2)
    out2 = jax.block_until_ready(fins_conditional_batch_norm_1d(x2, noise2, params2))
    ref2 = _reference(x2, noise2, params2)
    assert out2.shape == (B2, C2, L2)
    assert jnp.allclose(out2, ref2, atol=1e-4, rtol=1e-4), "mismatch (ragged case)"

    print("KERNEL_OK")
</pallas_src>

<mosaic_0001>
module attributes {stable_mosaic.version = 11 : i64} {
  func.func @_stats_kernel(%arg0: i32, %arg1: i32, %arg2: i32, %arg3: i32, %arg4: memref<2x4x16xf32, #tpu.memory_space<vmem>>, %arg5: memref<1x4x16xf32, #tpu.memory_space<vmem>>, %arg6: memref<1x4x16xf32, #tpu.memory_space<vmem>>) attributes {dimension_semantics = [#tpu.dimension_semantics<parallel>, #tpu.dimension_semantics<parallel>, #tpu.dimension_semantics<arbitrary>, #tpu.dimension_semantics<arbitrary>], iteration_bounds = array<i64: 1, 1, 1, 1>, scalar_prefetch = 0 : i64, scratch_operands = 0 : i64, tpu.core_type = #tpu.core_type<tc>, window_params = [{transform_indices = @transform_0, window_bounds = array<i64: 2, 4, 16>}, {transform_indices = @transform_1, window_bounds = array<i64: 1, 4, 16>}, {transform_indices = @transform_2, window_bounds = array<i64: 1, 4, 16>}]} {
    %c0_i32 = arith.constant 0 : i32
    %0 = arith.cmpi eq, %arg2, %c0_i32 : i32
    %c0_i32_0 = arith.constant 0 : i32
    %1 = arith.cmpi eq, %arg3, %c0_i32_0 : i32
    %2 = arith.andi %0, %1 : i1
    %3 = arith.extui %2 : i1 to i32
    %c0_i32_1 = arith.constant 0 : i32
    %4 = arith.cmpi ne, %3, %c0_i32_1 : i32
    scf.if %4 {
      %cst_19 = arith.constant 0.000000e+00 : f32
      %21 = vector.broadcast %cst_19 : f32 to vector<1x4x16xf32>
      %c0_20 = arith.constant 0 : index
      %c0_21 = arith.constant 0 : index
      %c0_22 = arith.constant 0 : index
      %22 = vector.load %arg5[%c0_20, %c0_21, %c0_22] : memref<1x4x16xf32, #tpu.memory_space<vmem>>, vector<1x4x16xf32>
      tpu.vector_store %arg5[%c0_20, %c0_21, %c0_22], %21 {strides = array<i32>} : memref<1x4x16xf32, #tpu.memory_space<vmem>>, vector<1x4x16xf32>,
      %cst_23 = arith.constant 0.000000e+00 : f32
      %23 = vector.broadcast %cst_23 : f32 to vector<1x4x16xf32>
      %c0_24 = arith.constant 0 : index
      %c0_25 = arith.constant 0 : index
      %c0_26 = arith.constant 0 : index
      %24 = vector.load %arg6[%c0_24, %c0_25, %c0_26] : memref<1x4x16xf32, #tpu.memory_space<vmem>>, vector<1x4x16xf32>
      tpu.vector_store %arg6[%c0_24, %c0_25, %c0_26], %23 {strides = array<i32>} : memref<1x4x16xf32, #tpu.memory_space<vmem>>, vector<1x4x16xf32>,
    } else {
    }
    %cst = arith.constant 0.000000e+00 : f32
    %5 = vector.broadcast %cst : f32 to vector<4x16xf32>
    %cst_2 = arith.constant 0.000000e+00 : f32
    %6 = vector.broadcast %cst_2 : f32 to vector<4x16xf32>
    %c0 = arith.constant 0 : index
    %c0_3 = arith.constant 0 : index
    %c0_4 = arith.constant 0 : index
    %7 = vector.load %arg4[%c0, %c0_3, %c0_4] : memref<2x4x16xf32, #tpu.memory_space<vmem>>, vector<2x4x16xf32>
    %cst_5 = arith.constant dense<0.000000e+00> : vector<4x16xf32>
    %8 = vector.multi_reduction <add>, %7, %cst_5 [0] : vector<2x4x16xf32> to vector<4x16xf32>
    %9 = arith.mulf %7, %7 : vector<2x4x16xf32>
    %cst_6 = arith.constant dense<0.000000e+00> : vector<4x16xf32>
    %10 = vector.multi_reduction <add>, %9, %cst_6 [0] : vector<2x4x16xf32> to vector<4x16xf32>
    %11 = arith.addf %5, %8 : vector<4x16xf32>
    %12 = arith.addf %6, %10 : vector<4x16xf32>
    %c0_7 = arith.constant 0 : index
    %c0_8 = arith.constant 0 : index
    %c0_9 = arith.constant 0 : index
    %13 = vector.load %arg5[%c0_7, %c0_8, %c0_9] : memref<1x4x16xf32, #tpu.memory_space<vmem>>, vector<1x4x16xf32>
    %14 = vector.shape_cast %11 : vector<4x16xf32> to vector<1x4x16xf32>
    %15 = arith.addf %13, %14 : vector<1x4x16xf32>
    %c0_10 = arith.constant 0 : index
    %c0_11 = arith.constant 0 : index
    %c0_12 = arith.constant 0 : index
    %16 = vector.load %arg5[%c0_10, %c0_11, %c0_12] : memref<1x4x16xf32, #tpu.memory_space<vmem>>, vector<1x4x16xf32>
    tpu.vector_store %arg5[%c0_10, %c0_11, %c0_12], %15 {strides = array<i32>} : memref<1x4x16xf32, #tpu.memory_space<vmem>>, vector<1x4x16xf32>,
    %c0_13 = arith.constant 0 : index
    %c0_14 = arith.constant 0 : index
    %c0_15 = arith.constant 0 : index
    %17 = vector.load %arg6[%c0_13, %c0_14, %c0_15] : memref<1x4x16xf32, #tpu.memory_space<vmem>>, vector<1x4x16xf32>
    %18 = vector.shape_cast %12 : vector<4x16xf32> to vector<1x4x16xf32>
    %19 = arith.addf %17, %18 : vector<1x4x16xf32>
    %c0_16 = arith.constant 0 : index
    %c0_17 = arith.constant 0 : index
    %c0_18 = arith.constant 0 : index
    %20 = vector.load %arg6[%c0_16, %c0_17, %c0_18] : memref<1x4x16xf32, #tpu.memory_space<vmem>>, vector<1x4x16xf32>
    tpu.vector_store %arg6[%c0_16, %c0_17, %c0_18], %19 {strides = array<i32>} : memref<1x4x16xf32, #tpu.memory_space<vmem>>, vector<1x4x16xf32>,
    return
  }
  func.func @transform_0(%arg0: i32, %arg1: i32, %arg2: i32, %arg3: i32) -> (i32, i32, i32) {
    %c1_i32 = arith.constant 1 : i32
    %0 = arith.muli %arg0, %c1_i32 : i32
    %1 = arith.addi %0, %arg3 : i32
    %c0_i32 = arith.constant 0 : i32
    return %arg2, %arg1, %1 : i32, i32, i32
  }
  func.func @transform_1(%arg0: i32, %arg1: i32, %arg2: i32, %arg3: i32) -> (i32, i32, i32) {
    %c0_i32 = arith.constant 0 : i32
    %c0_i32_0 = arith.constant 0 : i32
    return %arg0, %arg1, %c0_i32 : i32, i32, i32
  }
  func.func @transform_2(%arg0: i32, %arg1: i32, %arg2: i32, %arg3: i32) -> (i32, i32, i32) {
    %c0_i32 = arith.constant 0 : i32
    %c0_i32_0 = arith.constant 0 : i32
    return %arg0, %arg1, %c0_i32 : i32, i32, i32
  }
}

</mosaic_0001>

<bundles_post_ra>
// kernel: tpu_custom_call.1
= control target key start
LH: loop header
LB: loop body
LE: loop exit
PB: predicated region body
PF: predicated region fallthrough
CT: control target
= control target key end

     0   :  { %8 = vsyncpa [#allocation3], 0  ;;  %s230_s0 = inlined_call_operand.hbm [shape: f32[2,4,16], index: 0, kind: input, shape index: {}]   ;;  %s231_s1 = inlined_call_operand.hbm [shape: f32[1,4,16], index: 1, kind: output, shape index: {0}]   ;;  %s232_s2 = inlined_call_operand.hbm [shape: f32[1,4,16], index: 2, kind: output, shape index: {1}]  }
   0x1   :  { %9 = vsyncpa [#allocation4], 0 }
   0x2   :  { %10 = vsyncpa [#allocation7], 0  ;;  %s165_s9 = smov [#allocation2]   ;;  %s93_s13 = scalar_lea.hbm %s230_s0, 128 }
   0x3   :  { %s19_s10 = sshll.u32 %s165_s9, 4  ;;  %p94_p0 = scmp.ne.s32.totalorder %s230_s0, %s93_s13  ;;  %s20_s10 = int_to_ptr.vmem [resolvable:$true] %s19_s10 }
   0x4   :  { %p97_p1 = scmp.lt.u32.totalorder %s93_s13, %s230_s0 }
   0x6   :  { %p99_p2 = pnand %p97_p1, %p94_p0 }
   0x8   :  { %102 = shalt.err (!%p99_p2)
}
   0x9   :  { %s103_s18 = scalar_lea.vmem %s20_s10, 128  ;;  %p108_p4 = scmp.lt.s32.totalorder %s20_s10, %s20_s10 }
   0xa   :  { %p104_p3 = scmp.ne.s32.totalorder %s20_s10, %s103_s18  ;;  %p109_p5 = scmp.lt.s32.totalorder %s103_s18, %s103_s18 }
   0xc   :  { %p110_p6 = por %p109_p5, %p108_p4 }
   0xe   :  { %p111_p7 = pnand %p110_p6, %p104_p3 }
  0x10   :  { %114 = shalt.err (!%p111_p7)
}
  0x11   :  { %s166_s19 = smov 64   ;;  %s167_s20 = smov 4  }
  0x12   :  { %25 = dma.hbm_to_vmem [thread:$0]  %s230_s0, 128, %s20_s10, [#allocation3], %s166_s19, %s166_s19, %s167_s20  }
  0x13   :  { %159 = dma.done.wait [#allocation3], 128  }
  0x14   :  { %160 = vsyncadd [#allocation3], 4294967168  ;;  %vm36_vm0 = vcmask 125952   ;;  %v168_v0 = vmov 0.0   ;;  %v39_v1 = vld [vmem:[#allocation2] sm:$0xf] }
  0x15   :  { %37 = vst.msk [vmem:[#allocation5] sm:$0xf] %vm36_vm0, %v168_v0  ;;  %38 = vst.msk [vmem:[#allocation6] sm:$0xf] %vm36_vm0, %v168_v0  ;;  %v40_v2 = vld [vmem:[#allocation2 + $0x4] sm:$0xf]  ;;  %v45_v6 = vmul.f32 %v39_v1, %v39_v1 }
  0x16   :  { %v42_v3 = vsel %vm36_vm0, %v39_v1, 0.0  ;;  %v43_v4 = vsel %vm36_vm0, %v40_v2, 0.0  ;;  %v46_v7 = vmul.f32 %v40_v2, %v40_v2  ;;  %s169_s23 = smov [#allocation5]   ;;  %s170_s0 = smov [#allocation6]  }
  0x17   :  { %s64_s24 = sshll.u32 %s169_s23, 4  ;;  %v44_v8 = vadd.f32 %v43_v4, %v42_v3  ;;  %v47_v9 = vsel %vm36_vm0, %v45_v6, 0.0  ;;  %s74_s25 = sshll.u32 %s170_s0, 4  ;;  %s65_s24 = int_to_ptr.vmem [resolvable:$true] %s64_s24  ;;  %s75_s25 = int_to_ptr.vmem [resolvable:$true] %s74_s25 }
  0x18   :  { %v48_v10 = vsel %vm36_vm0, %v46_v7, 0.0  ;;  %s115_s26 = scalar_lea.vmem %s65_s24, 64  ;;  %p120_p9 = scmp.lt.s32.totalorder %s65_s24, %s65_s24 }
  0x19   :  { %v49_v13 = vadd.f32 %v48_v10, %v47_v9  ;;  %p116_p8 = scmp.ne.s32.totalorder %s65_s24, %s115_s26  ;;  %p121_p10 = scmp.lt.s32.totalorder %s115_s26, %s115_s26 }
  0x1b   :  { %p122_p11 = por %p121_p10, %p120_p9 }
  0x1c   :  { %v52_v5 = vld [vmem:[#allocation5] sm:$0xf]  ;;  %v55_v11 = vld [vmem:[#allocation6] sm:$0xf] }
  0x1d   :  { %v53_v12 = vadd.f32 %v52_v5, %v44_v8  ;;  %v56_v14 = vadd.f32 %v55_v11, %v49_v13  ;;  %p123_p12 = pnand %p122_p11, %p116_p8 }
  0x1f   :  { %54 = vst.msk [vmem:[#allocation5] sm:$0xf] %vm36_vm0, %v53_v12 }
  0x20   :  { %126 = shalt.err (!%p123_p12)
}
  0x21   :  { %s127_s29 = scalar_lea.hbm %s231_s1, 64 }
  0x22   :  { %p128_p13 = scmp.ne.s32.totalorder %s231_s1, %s127_s29  ;;  %p131_p0 = scmp.lt.u32.totalorder %s127_s29, %s231_s1 }
  0x24   :  { %p133_p1 = pnand %p131_p0, %p128_p13 }
  0x26   :  { %136 = shalt.err (!%p133_p1)
}
  0x27   :  { %67 = dma.vmem_to_hbm [thread:$0]  %s65_s24, 64, %s231_s1, [#allocation4]   ;;  %57 = vst.msk [vmem:[#allocation6] sm:$0xf] %vm36_vm0, %v56_v14 }
  0x28   :  { %s137_s8 = scalar_lea.vmem %s75_s25, 64  ;;  %p142_p3 = scmp.lt.s32.totalorder %s75_s25, %s75_s25 }
  0x29   :  { %p138_p2 = scmp.ne.s32.totalorder %s75_s25, %s137_s8  ;;  %p143_p4 = scmp.lt.s32.totalorder %s137_s8, %s137_s8 }
  0x2b   :  { %p144_p5 = por %p143_p4, %p142_p3 }
  0x2d   :  { %p145_p6 = pnand %p144_p5, %p138_p2 }
  0x2f   :  { %148 = shalt.err (!%p145_p6)
}
  0x30   :  { %s149_s11 = scalar_lea.hbm %s232_s2, 64 }
  0x31   :  { %p150_p7 = scmp.ne.s32.totalorder %s232_s2, %s149_s11  ;;  %p153_p8 = scmp.lt.u32.totalorder %s149_s11, %s232_s2 }
  0x33   :  { %p155_p9 = pnand %p153_p8, %p150_p7 }
  0x35   :  { %158 = shalt.err (!%p155_p9)
}
  0x36   :  { %77 = dma.vmem_to_hbm [thread:$0]  %s75_s25, 64, %s232_s2, [#allocation7]  }
  0x37   :  { %161 = dma.done.wait [#allocation4], 64  }
  0x38   :  { %162 = vsyncadd [#allocation4], 4294967232 }
  0x39   :  { %163 = dma.done.wait [#allocation7], 64  }
  0x3a   :  { %164 = vsyncadd [#allocation7], 4294967232 }
  0x3b   :  { %84 = vsyncpa [#allocation3], 1 }
  0x3c   :  { %85 = vsyncpa [#allocation4], 1 }
  0x3d   :  { %86 = vsyncpa [#allocation7], 1 }

</bundles_post_ra>
